<compile_context>
chip_gen: v5e
topology: v5e:2x2
jax: 0.10.0
libtpu: 0.0.40
codegen_flags: <defaults>
</compile_context>

<pallas_src>
import jax
import jax.numpy as jnp
from jax.experimental import pallas as pl
from jax.experimental.pallas import tpu as pltpu


class IncorrectShapeError(ValueError):
    def __init__(self, x_size, y_size):
        super().__init__(
            f"Incorrect shape: got {tuple(x_size)}, expected {tuple(y_size)}"
        )


def check_size(x_size, y_size):
    if tuple(x_size) != tuple(y_size):
        raise IncorrectShapeError(x_size, y_size)


# ------------- Pallas identity kernels (framework / forced-pallas path) -------------

def _dma_identity_kernel(x_ref, o_ref, sem):
    # Single HBM->HBM DMA of the whole array: no VMEM round trip, no vld/vst
    # bundle work, no per-tile overhead.
    cp = pltpu.make_async_copy(x_ref, o_ref, sem)
    cp.start()
    cp.wait()


def _aliased_identity_kernel(x_ref, o_ref):
    # Output aliases the input HBM buffer (input_output_aliases={0: 0}); the
    # data is already in place, so just pin the ordering dependency.
    del x_ref
    pltpu.touch(o_ref)


def pallas_identity_copy(x, *, donate=False):
    """Identity through a pallas_call.

    donate=False: one HBM->HBM DMA (2 * nbytes of HBM traffic, DMA roofline).
    donate=True : output aliases the input buffer (~0 HBM traffic).  Use only
                  when the caller treats `x` as donated (will not reuse it).
    """
    if x.size == 0:
        return x

    nbytes = int(x.size) * x.dtype.itemsize
    common = dict(
        out_shape=jax.ShapeDtypeStruct(x.shape, x.dtype),
        in_specs=[pl.BlockSpec(memory_space=pl.ANY)],
        out_specs=pl.BlockSpec(memory_space=pl.ANY),
    )

    if donate:
        return pl.pallas_call(
            _aliased_identity_kernel,
            input_output_aliases={0: 0},
            cost_estimate=pl.CostEstimate(
                flops=0, transcendentals=0, bytes_accessed=0),
            **common,
        )(x)

    return pl.pallas_call(
        _dma_identity_kernel,
        scratch_shapes=[pltpu.SemaphoreType.DMA(())],
        cost_estimate=pl.CostEstimate(
            flops=0, transcendentals=0, bytes_accessed=2 * nbytes),
        **common,
    )(x)


# ------------------------------------ Module ------------------------------------

class InputLayer:
    """JAX equivalent of the PyTorch InputLayer (shape-checked identity).

    Hot path (default): validate the non-batch dims at call time and return x
    unchanged — zero bytes moved, identical to the PyTorch module.

    use_pallas_copy=True routes through a Pallas kernel (only needed when a
    pallas_call must appear in the graph for framework reasons):
      * donate_input=False -> single HBM->HBM DMA copy.
      * donate_input=True  -> aliased output, near-zero-cost no-op kernel.
    """

    def __init__(self, target_shape, use_pallas_copy=False, donate_input=False):
        self.__target_shape = tuple(target_shape)
        self.__use_pallas_copy = use_pallas_copy
        self.__donate_input = donate_input

    def __call__(self, x: jax.Array) -> jax.Array:
        # Shape check: all dims except the leading batch dim must match.
        check_size(x.shape[1:], self.__target_shape)
        if not self.__use_pallas_copy:
            return x  # identity — no HBM read/write at all
        return pallas_identity_copy(x, donate=self.__donate_input)

    def get_output_shape(self):
        return self.__target_shape


if __name__ == "__main__":
    key = jax.random.PRNGKey(0)
    # NCHW input consistent with a conv-style model: batch=2, channels=4, 16x16.
    x = jax.random.normal(key, (2, 4, 16, 16), dtype=jnp.float32)

    # 1) Hot path: pure pass-through (top performance recommendation).
    layer = InputLayer(target_shape=(4, 16, 16))
    y = jax.block_until_ready(layer(x))
    assert y.shape == x.shape and y.dtype == x.dtype
    assert bool(jnp.array_equal(y, x))

    # 2) Kernel path: single HBM->HBM DMA identity copy.
    layer_k = InputLayer(target_shape=(4, 16, 16), use_pallas_copy=True)
    yk = jax.block_until_ready(layer_k(x))
    assert yk.shape == x.shape and yk.dtype == x.dtype
    assert bool(jnp.array_equal(yk, x))

    # 3) Negative check: wrong shape must raise, as in the PyTorch module.
    try:
        layer(jax.random.normal(key, (2, 3, 16, 16), dtype=jnp.float32))
        raise AssertionError("expected IncorrectShapeError")
    except IncorrectShapeError:
        pass

    print("KERNEL_OK")
</pallas_src>

<mosaic_0001>
module attributes {stable_mosaic.version = 11 : i64} {
  func.func @_dma_identity_kernel(%arg0: memref<2x4x16x16xf32, #tpu.memory_space<any>>, %arg1: memref<2x4x16x16xf32, #tpu.memory_space<any>>, %arg2: memref<!tpu.dma_semaphore, #tpu.memory_space<semaphore_mem>>) attributes {dimension_semantics = [], scalar_prefetch = 0 : i64, scratch_operands = 1 : i64, tpu.core_type = #tpu.core_type<tc>} {
    tpu.enqueue_dma source(%arg0 : memref<2x4x16x16xf32, #tpu.memory_space<any>>) target(%arg1 : memref<2x4x16x16xf32, #tpu.memory_space<any>>) target_semaphore(%arg2 : memref<!tpu.dma_semaphore, #tpu.memory_space<semaphore_mem>>)
    tpu.wait_dma2 semaphore(%arg2 : memref<!tpu.dma_semaphore, #tpu.memory_space<semaphore_mem>>) src(%arg0 : memref<2x4x16x16xf32, #tpu.memory_space<any>>) dst(%arg1 : memref<2x4x16x16xf32, #tpu.memory_space<any>>)
    return
  }
}

</mosaic_0001>

<bundles_post_ra>
// kernel: tpu_custom_call.1
= control target key start
LH: loop header
LB: loop body
LE: loop exit
PB: predicated region body
PF: predicated region fallthrough
CT: control target
= control target key end

     0   :  { %s34_s12 = smov [#allocation2]   ;;  %s35_s13 = smov [#allocation3]   ;;  %s53_s0 = inlined_call_operand.hbm [shape: f32[2,4,16,16], index: 0, kind: input, shape index: {}]   ;;  %s54_s1 = inlined_call_operand.hbm [shape: f32[2,4,16,16], index: 1, kind: output, shape index: {}]  }
   0x1   :  { %s10_s8 = sshll.u32 %s53_s0, 4  ;;  %s12_s11 = sshll.u32 %s54_s1, 4  ;;  %s11_s8 = int_to_ptr.hbm [resolvable:$true] %s10_s8  ;;  %s13_s11 = int_to_ptr.hbm [resolvable:$true] %s12_s11 }
   0x2   :  { %s36_s14 = smov 0  }
   0x3   :  { %16 = dma.general %s11_s8, 2048, %s13_s11, %s34_s12, %s35_s13, [#allocation4], %s36_s14, 0  }
   0x4   :  { %32 = dma.done.wait [#allocation2], 2048 }
   0x5   :  { %33 = vsyncadd [#allocation2], 4294965248 }
   0x6   :  { %22 = vsyncmov [#allocation2] }
   0x9   :  { %s23_s15 = vpop.sfrf %22 }
   0xa   :  { %p28_p0 = scmp.ne.s32.totalorder %s23_s15, 0 }
   0xc   :  { %27 = shalt.err (%p28_p0)  }

</bundles_post_ra>
